<compile_context>
chip_gen: v6e
topology: v6e:2x2x1
jax: 0.10.0
libtpu: 0.0.40
codegen_flags: <defaults>
</compile_context>

<pallas_src>
import jax
import jax.numpy as jnp
from jax.experimental import pallas as pl
from jax.experimental.pallas import tpu as pltpu


def _round_up(n, m):
    return ((n + m - 1) // m) * m


# ---------------------------------------------------------------------------
# Kernel body
# ---------------------------------------------------------------------------
def gated_ae_kernel(x_ref, wenc_ref, wdec_ref, feat_ref, bdec_ref,
                    xhat_ref, acc_ref):
    """Grid = (batch tiles [parallel], F tiles [arbitrary reduction])."""
    j = pl.program_id(1)

    @pl.when(j == 0)
    def _init():
        acc_ref[...] = jnp.zeros_like(acc_ref)

    # Encoder matmul for this F tile (bf16 in, f32 accumulate on the MXU).
    # The b_dec subtraction is pre-folded into feat row 0 (= -(b_dec @ W_enc)).
    x_enc = jnp.dot(x_ref[...], wenc_ref[...],
                    preferred_element_type=jnp.float32) + feat_ref[0:1, :]

    # Gated magnitude path fused into a single VPU select.
    pi_gate = x_enc + feat_ref[2:3, :]                      # + gate_bias
    pi_mag = feat_ref[1:2, :] * x_enc + feat_ref[3:4, :]    # exp(r_mag)*x_enc + mag_bias
    f = jnp.where(pi_gate > 0, jnp.maximum(pi_mag, 0.0), 0.0)

    # Decoder partial matmul, accumulated in f32 across the F grid axis.
    acc_ref[...] += jnp.dot(f.astype(wdec_ref.dtype), wdec_ref[...],
                            preferred_element_type=jnp.float32)

    @pl.when(j == pl.num_programs(1) - 1)
    def _finalize():
        xhat_ref[...] = (acc_ref[...] + bdec_ref[...]).astype(xhat_ref.dtype)


# ---------------------------------------------------------------------------
# Per-chip configuration & VMEM budgeting
# ---------------------------------------------------------------------------
def _chip_config():
    """Tiling / VMEM budget keyed off VMEM capacity and device kind."""
    kind = ""
    try:
        kind = jax.devices()[0].device_kind.lower()
    except Exception:
        pass
    vmem_cap = 128 << 20
    try:
        info = pltpu.get_tpu_info()
        cap = getattr(info, "vmem_capacity_bytes", None)
        if cap:
            vmem_cap = int(cap)
    except Exception:
        if "v7" in kind:
            vmem_cap = 64 << 20
    if vmem_cap <= (64 << 20) or "v7" in kind:
        # v7x: 64 MiB VMEM/TC -> halve tf, leave headroom below physical VMEM,
        # and split the batch across the 2 TensorCores.
        return dict(tile_m=1024, tile_f=256, vmem_budget=48 << 20,
                    weight_buffers=2, split_megacore=True)
    if "v5" in kind:
        # v5e: ridge ~240 flops/B -> tm=512 is already MXU-bound.
        return dict(tile_m=512, tile_f=512, vmem_budget=96 << 20,
                    weight_buffers=3, split_megacore=False)
    # v6e (and default): ridge ~650 flops/B -> big batch tiles.
    return dict(tile_m=1024, tile_f=512, vmem_budget=96 << 20,
                weight_buffers=3, split_megacore=False)


def _vmem_estimate(tm, tf, Dp, wbuf, cd, od):
    """VMEM working-set estimate (bytes), including 8-sublane padding of small rows."""
    return (2 * tm * Dp * cd          # x tile (double buffered)
            + wbuf * Dp * tf * cd     # W_enc tile
            + wbuf * tf * Dp * cd     # W_dec tile
            + 2 * 8 * tf * 4          # packed per-feature table (pads to 8 sublanes)
            + 2 * 8 * Dp * 4          # decoder bias (pads to 8 sublanes)
            + 2 * tm * Dp * od        # output tile (double buffered)
            + tm * Dp * 4)            # f32 accumulator scratch


def _make_spec(block_shape, index_map, buffers=2):
    """BlockSpec, optionally with deeper pipelining when supported."""
    if buffers and buffers > 2:
        try:
            return pl.BlockSpec(block_shape, index_map,
                                pipeline_mode=pl.Buffered(buffers))
        except Exception:
            pass
    return pl.BlockSpec(block_shape, index_map)


# ---------------------------------------------------------------------------
# Wrapper
# ---------------------------------------------------------------------------
def gated_autoencoder_forward(x, wenc_mat, wdec_mat, decoder_bias,
                              r_mag, gate_bias, mag_bias, *,
                              tile_m=None, tile_f=None,
                              compute_dtype=jnp.bfloat16,
                              out_dtype=None):
    """x: (B, D).  wenc_mat = encoder.weight.T (D, F).  wdec_mat = decoder.weight.T (F, D)."""
    B, D = x.shape
    F = wenc_mat.shape[1]
    out_dtype = x.dtype if out_dtype is None else out_dtype
    f32 = jnp.float32

    cfg = _chip_config()
    tile_m = cfg["tile_m"] if tile_m is None else tile_m
    tile_f = cfg["tile_f"] if tile_f is None else tile_f
    wbuf = cfg["weight_buffers"]

    Dp = _round_up(D, 128)                          # lane-dense weights / output
    cd = jnp.dtype(compute_dtype).itemsize
    od = jnp.dtype(out_dtype).itemsize

    # --- tile selection -------------------------------------------------
    Bbase = _round_up(B, 16)                        # bf16 sublane packing
    Fbase = _round_up(F, 128)
    tm = min(max(16, _round_up(tile_m, 16)), Bbase)
    tf = min(max(128, _round_up(tile_f, 128)), Fbase)

    # Megacore: make sure both v7x TensorCores get a batch tile.
    if cfg["split_megacore"] and Bbase >= 512 and -(-Bbase // tm) < 2:
        tm = _round_up(-(-Bbase // 2), 16)

    # Shrink until the working set fits the per-chip VMEM budget.
    headroom = 4 << 20
    budget = cfg["vmem_budget"]
    while _vmem_estimate(tm, tf, Dp, wbuf, cd, od) + headroom > budget:
        if tm > 256:
            tm = _round_up(tm // 2, 16)
        elif tf > 128:
            tf = max(128, _round_up(tf // 2, 128))
        elif tm > 16:
            tm = _round_up(tm // 2, 16)
        else:
            break

    Bp = _round_up(B, tm)
    Fp = _round_up(F, tf)
    nF = Fp // tf
    eff_wbuf = wbuf if nF >= wbuf else 2

    # --- one-time precompute (f32) ---------------------------------------
    #   (x - b_dec) @ W_enc == x @ W_enc + (-(b_dec @ W_enc))
    enc_bias = -(decoder_bias.astype(f32) @ wenc_mat.astype(f32))   # (F,)
    exp_r_mag = jnp.exp(r_mag.astype(f32))                          # (F,)

    def pad2(a, rows, cols):
        return jnp.pad(a, ((0, rows - a.shape[0]), (0, cols - a.shape[1])))

    # Zero padding is semantically safe: padded features get pi_gate == 0
    # (not > 0) so f == 0; padded D lanes / batch rows are sliced off at the end.
    x_p = pad2(x.astype(compute_dtype), Bp, Dp)
    wenc_p = pad2(wenc_mat.astype(compute_dtype), Dp, Fp)
    wdec_p = pad2(wdec_mat.astype(compute_dtype), Fp, Dp)
    # Pre-tile W_enc so each streamed tile is one contiguous (Dp, tf) slab.
    wenc_t = wenc_p.reshape(Dp, nF, tf).transpose(1, 0, 2)          # (nF, Dp, tf)
    bdec_p = pad2(decoder_bias.reshape(1, D).astype(f32), 1, Dp)

    # Pack the four per-feature vectors into one (8, Fp) table -> one DMA/step.
    feat = jnp.zeros((8, Fp), f32)
    feat = feat.at[0, :F].set(enc_bias)
    feat = feat.at[1, :F].set(exp_r_mag)
    feat = feat.at[2, :F].set(gate_bias.astype(f32))
    feat = feat.at[3, :F].set(mag_bias.astype(f32))

    grid = (Bp // tm, Fp // tf)                     # batch parallel, F reduction last

    vmem_limit = int(min(budget,
                         max(_vmem_estimate(tm, tf, Dp, eff_wbuf, cd, od) + headroom,
                             32 << 20)))

    out_p = pl.pallas_call(
        gated_ae_kernel,
        out_shape=jax.ShapeDtypeStruct((Bp, Dp), out_dtype),
        grid_spec=pltpu.PrefetchScalarGridSpec(
            num_scalar_prefetch=0,
            grid=grid,
            in_specs=[
                pl.BlockSpec((tm, Dp), lambda i, j: (i, 0)),            # x (resident over j)
                _make_spec((None, Dp, tf), lambda i, j: (j, 0, 0),
                           eff_wbuf),                                   # W_enc tile (contig slab)
                _make_spec((tf, Dp), lambda i, j: (j, 0), eff_wbuf),    # W_dec tile
                pl.BlockSpec((8, tf), lambda i, j: (0, j)),             # packed feature table
                pl.BlockSpec((1, Dp), lambda i, j: (0, 0)),             # decoder bias
            ],
            out_specs=pl.BlockSpec((tm, Dp), lambda i, j: (i, 0)),
            scratch_shapes=[pltpu.VMEM((tm, Dp), jnp.float32)],
        ),
        compiler_params=pltpu.CompilerParams(
            dimension_semantics=("parallel", "arbitrary"),
            vmem_limit_bytes=vmem_limit),
    )(x_p, wenc_t, wdec_p, feat, bdec_p)

    return out_p[:B, :D]


# ---------------------------------------------------------------------------
# Parameter init (mirrors GatedAutoEncoder._reset_parameters) and f32 reference
# ---------------------------------------------------------------------------
def init_params(key, activation_dim, dict_size):
    dec_weight = jax.random.normal(key, (activation_dim, dict_size), dtype=jnp.float32)
    dec_weight = dec_weight / jnp.linalg.norm(dec_weight, axis=0, keepdims=True)
    wenc_mat = dec_weight                     # encoder.weight.T -> (D, F)
    wdec_mat = dec_weight.T                   # decoder.weight.T -> (F, D)
    decoder_bias = jnp.zeros((activation_dim,), jnp.float32)
    r_mag = jnp.zeros((dict_size,), jnp.float32)
    gate_bias = jnp.zeros((dict_size,), jnp.float32)
    mag_bias = jnp.zeros((dict_size,), jnp.float32)
    return wenc_mat, wdec_mat, decoder_bias, r_mag, gate_bias, mag_bias


def reference_forward(x, wenc_mat, wdec_mat, decoder_bias, r_mag, gate_bias, mag_bias):
    """Faithful f32 reference of the PyTorch forward()."""
    x_enc = (x - decoder_bias) @ wenc_mat
    pi_gate = x_enc + gate_bias
    f_gate = (pi_gate > 0).astype(x.dtype)
    pi_mag = jnp.exp(r_mag) * x_enc + mag_bias
    f_mag = jnp.maximum(pi_mag, 0.0)
    f = f_gate * f_mag
    return f @ wdec_mat + decoder_bias


if __name__ == "__main__":
    # Small shapes that exercise the padding paths (D->128, F->256, B->48).
    activation_dim = 96
    dict_size = 160
    batch = 40

    key = jax.random.PRNGKey(0)
    k_w, k_x, k_b = jax.random.split(key, 3)
    wenc_mat, wdec_mat, decoder_bias, r_mag, gate_bias, mag_bias = init_params(
        k_w, activation_dim, dict_size)
    x = jax.random.normal(k_x, (batch, activation_dim), dtype=jnp.float32)

    # Case 1: default (zero-bias) initialization.
    x_hat = jax.block_until_ready(
        gated_autoencoder_forward(x, wenc_mat, wdec_mat, decoder_bias,
                                  r_mag, gate_bias, mag_bias))
    x_hat_ref = reference_forward(x, wenc_mat, wdec_mat, decoder_bias,
                                  r_mag, gate_bias, mag_bias)
    err1 = jnp.max(jnp.abs(x_hat - x_hat_ref))
    assert jnp.allclose(x_hat, x_hat_ref, atol=5e-2, rtol=5e-2), (
        f"mismatch vs reference (zero biases), max abs err {err1}")

    # Case 2: nonzero b_dec / r_mag / gate_bias / mag_bias — exercises the
    # folded -(b_dec @ W_enc) path and the gating/magnitude arithmetic.
    kb1, kb2, kb3, kb4 = jax.random.split(k_b, 4)
    decoder_bias2 = 0.5 * jax.random.normal(kb1, (activation_dim,), jnp.float32)
    r_mag2 = 0.2 * jax.random.normal(kb2, (dict_size,), jnp.float32)
    gate_bias2 = 0.5 * jax.random.normal(kb3, (dict_size,), jnp.float32)
    mag_bias2 = 0.5 * jax.random.normal(kb4, (dict_size,), jnp.float32)
    x_hat2 = jax.block_until_ready(
        gated_autoencoder_forward(x, wenc_mat, wdec_mat, decoder_bias2,
                                  r_mag2, gate_bias2, mag_bias2))
    x_hat2_ref = reference_forward(x, wenc_mat, wdec_mat, decoder_bias2,
                                   r_mag2, gate_bias2, mag_bias2)
    err2 = jnp.max(jnp.abs(x_hat2 - x_hat2_ref))
    assert jnp.allclose(x_hat2, x_hat2_ref, atol=7e-2, rtol=7e-2), (
        f"mismatch vs reference (nonzero biases), max abs err {err2}")

    print("KERNEL_OK")
</pallas_src>

<mosaic_0001>
module attributes {stable_mosaic.version = 11 : i64} {
  func.func @gated_ae_kernel(%arg0: i32, %arg1: i32, %arg2: memref<48x128xbf16, #tpu.memory_space<vmem>>, %arg3: memref<1x128x256xbf16, #tpu.memory_space<vmem>>, %arg4: memref<256x128xbf16, #tpu.memory_space<vmem>>, %arg5: memref<8x256xf32, #tpu.memory_space<vmem>>, %arg6: memref<1x128xf32, #tpu.memory_space<vmem>>, %arg7: memref<48x128xf32, #tpu.memory_space<vmem>>, %arg8: memref<48x128xf32, #tpu.memory_space<vmem>>) attributes {dimension_semantics = [#tpu.dimension_semantics<parallel>, #tpu.dimension_semantics<arbitrary>], iteration_bounds = array<i64: 1, 1>, scalar_prefetch = 0 : i64, scratch_operands = 1 : i64, tpu.core_type = #tpu.core_type<tc>, window_params = [{transform_indices = @transform_0, window_bounds = array<i64: 48, 128>}, {transform_indices = @transform_1, window_bounds = array<i64: 1, 128, 256>}, {transform_indices = @transform_2, window_bounds = array<i64: 256, 128>}, {transform_indices = @transform_3, window_bounds = array<i64: 8, 256>}, {pipeline_mode = #tpu.pipeline_mode<synchronous>, transform_indices = @transform_4, window_bounds = array<i64: 1, 128>}, {transform_indices = @transform_5, window_bounds = array<i64: 48, 128>}]} {
    %c0_i32 = arith.constant 0 : i32
    %0 = arith.cmpi eq, %arg1, %c0_i32 : i32
    %1 = arith.extui %0 : i1 to i32
    %c0_i32_0 = arith.constant 0 : i32
    %2 = arith.cmpi ne, %1, %c0_i32_0 : i32
    scf.if %2 {
      %cst_22 = arith.constant 0.000000e+00 : f32
      %34 = vector.broadcast %cst_22 : f32 to vector<48x128xf32>
      %c0_23 = arith.constant 0 : index
      %c0_24 = arith.constant 0 : index
      %35 = vector.load %arg8[%c0_23, %c0_24] : memref<48x128xf32, #tpu.memory_space<vmem>>, vector<48x128xf32>
      tpu.vector_store %arg8[%c0_23, %c0_24], %34 {strides = array<i32>} : memref<48x128xf32, #tpu.memory_space<vmem>>, vector<48x128xf32>,
    } else {
    }
    %c0 = arith.constant 0 : index
    %c0_1 = arith.constant 0 : index
    %3 = vector.load %arg2[%c0, %c0_1] : memref<48x128xbf16, #tpu.memory_space<vmem>>, vector<48x128xbf16>
    %c0_2 = arith.constant 0 : index
    %c0_3 = arith.constant 0 : index
    %c0_4 = arith.constant 0 : index
    %4 = vector.load %arg3[%c0_2, %c0_3, %c0_4] : memref<1x128x256xbf16, #tpu.memory_space<vmem>>, vector<1x128x256xbf16>
    %5 = vector.shape_cast %4 : vector<1x128x256xbf16> to vector<128x256xbf16>
    %cst = arith.constant dense<0.000000e+00> : vector<48x256xf32>
    %6 = tpu.matmul %3, %5, %cst {dimension_numbers = #tpu.dot_dimension_numbers<[1], [0], [0], [1], [0, 0, 1, 1], [], []>} : vector<48x128xbf16>, vector<128x256xbf16>, vector<48x256xf32> -> vector<48x256xf32>
    %c0_5 = arith.constant 0 : index
    %c0_6 = arith.constant 0 : index
    %7 = vector.load %arg5[%c0_5, %c0_6] : memref<8x256xf32, #tpu.memory_space<vmem>>, vector<1x256xf32>
    %8 = vector.broadcast %7 : vector<1x256xf32> to vector<48x256xf32>
    %9 = arith.addf %6, %8 : vector<48x256xf32>
    %c2 = arith.constant 2 : index
    %c0_7 = arith.constant 0 : index
    %10 = vector.load %arg5[%c2, %c0_7] : memref<8x256xf32, #tpu.memory_space<vmem>>, vector<1x256xf32>
    %11 = vector.broadcast %10 : vector<1x256xf32> to vector<48x256xf32>
    %12 = arith.addf %9, %11 : vector<48x256xf32>
    %c1 = arith.constant 1 : index
    %c0_8 = arith.constant 0 : index
    %13 = vector.load %arg5[%c1, %c0_8] : memref<8x256xf32, #tpu.memory_space<vmem>>, vector<1x256xf32>
    %14 = vector.broadcast %13 : vector<1x256xf32> to vector<48x256xf32>
    %15 = arith.mulf %14, %9 : vector<48x256xf32>
    %c3 = arith.constant 3 : index
    %c0_9 = arith.constant 0 : index
    %16 = vector.load %arg5[%c3, %c0_9] : memref<8x256xf32, #tpu.memory_space<vmem>>, vector<1x256xf32>
    %17 = vector.broadcast %16 : vector<1x256xf32> to vector<48x256xf32>
    %18 = arith.addf %15, %17 : vector<48x256xf32>
    %cst_10 = arith.constant 0.000000e+00 : f32
    %19 = vector.broadcast %cst_10 : f32 to vector<48x256xf32>
    %20 = arith.cmpf ogt, %12, %19 : vector<48x256xf32>
    %cst_11 = arith.constant 0.000000e+00 : f32
    %21 = vector.broadcast %cst_11 : f32 to vector<48x256xf32>
    %22 = arith.maximumf %18, %21 : vector<48x256xf32>
    %cst_12 = arith.constant 0.000000e+00 : f32
    %23 = vector.broadcast %cst_12 : f32 to vector<48x256xf32>
    %24 = arith.select %20, %22, %23 : vector<48x256xi1>, vector<48x256xf32>
    %c0_13 = arith.constant 0 : index
    %c0_14 = arith.constant 0 : index
    %25 = vector.load %arg8[%c0_13, %c0_14] : memref<48x128xf32, #tpu.memory_space<vmem>>, vector<48x128xf32>
    %26 = arith.truncf %24 : vector<48x256xf32> to vector<48x256xbf16>
    %c0_15 = arith.constant 0 : index
    %c0_16 = arith.constant 0 : index
    %27 = vector.load %arg4[%c0_15, %c0_16] : memref<256x128xbf16, #tpu.memory_space<vmem>>, vector<256x128xbf16>
    %cst_17 = arith.constant dense<0.000000e+00> : vector<48x128xf32>
    %28 = tpu.matmul %26, %27, %cst_17 {dimension_numbers = #tpu.dot_dimension_numbers<[1], [0], [0], [1], [0, 0, 1, 1], [], []>} : vector<48x256xbf16>, vector<256x128xbf16>, vector<48x128xf32> -> vector<48x128xf32>
    %29 = arith.addf %25, %28 : vector<48x128xf32>
    %c0_18 = arith.constant 0 : index
    %c0_19 = arith.constant 0 : index
    %30 = vector.load %arg8[%c0_18, %c0_19] : memref<48x128xf32, #tpu.memory_space<vmem>>, vector<48x128xf32>
    tpu.vector_store %arg8[%c0_18, %c0_19], %29 {strides = array<i32>} : memref<48x128xf32, #tpu.memory_space<vmem>>, vector<48x128xf32>,
    %c0_i32_20 = arith.constant 0 : i32
    %31 = arith.cmpi eq, %arg1, %c0_i32_20 : i32
    %32 = arith.extui %31 : i1 to i32
    %c0_i32_21 = arith.constant 0 : i32
    %33 = arith.cmpi ne, %32, %c0_i32_21 : i32
    scf.if %33 {
      %c0_22 = arith.constant 0 : index
      %c0_23 = arith.constant 0 : index
      %34 = vector.load %arg8[%c0_22, %c0_23] : memref<48x128xf32, #tpu.memory_space<vmem>>, vector<48x128xf32>
      %c0_24 = arith.constant 0 : index
      %c0_25 = arith.constant 0 : index
      %35 = vector.load %arg6[%c0_24, %c0_25] : memref<1x128xf32, #tpu.memory_space<vmem>>, vector<1x128xf32>
      %36 = vector.broadcast %35 : vector<1x128xf32> to vector<48x128xf32>
      %37 = arith.addf %34, %36 : vector<48x128xf32>
      %c0_26 = arith.constant 0 : index
      %c0_27 = arith.constant 0 : index
      %38 = vector.load %arg7[%c0_26, %c0_27] : memref<48x128xf32, #tpu.memory_space<vmem>>, vector<48x128xf32>
      tpu.vector_store %arg7[%c0_26, %c0_27], %37 {strides = array<i32>} : memref<48x128xf32, #tpu.memory_space<vmem>>, vector<48x128xf32>,
    } else {
    }
    return
  }
  func.func @transform_0(%arg0: i32, %arg1: i32) -> (i32, i32) {
    %c0_i32 = arith.constant 0 : i32
    %c0_i32_0 = arith.constant 0 : i32
    return %arg0, %c0_i32 : i32, i32
  }
  func.func @transform_1(%arg0: i32, %arg1: i32) -> (i32, i32, i32) {
    %c0_i32 = arith.constant 0 : i32
    %c0_i32_0 = arith.constant 0 : i32
    %c0_i32_1 = arith.constant 0 : i32
    return %arg1, %c0_i32, %c0_i32_0 : i32, i32, i32
  }
  func.func @transform_2(%arg0: i32, %arg1: i32) -> (i32, i32) {
    %c0_i32 = arith.constant 0 : i32
    %c0_i32_0 = arith.constant 0 : i32
    return %arg1, %c0_i32 : i32, i32
  }
  func.func @transform_3(%arg0: i32, %arg1: i32) -> (i32, i32) {
    %c0_i32 = arith.constant 0 : i32
    %c0_i32_0 = arith.constant 0 : i32
    return %c0_i32, %arg1 : i32, i32
  }
  func.func @transform_4(%arg0: i32, %arg1: i32) -> (i32, i32) {
    %c0_i32 = arith.constant 0 : i32
    %c0_i32_0 = arith.constant 0 : i32
    %c0_i32_1 = arith.constant 0 : i32
    return %c0_i32, %c0_i32_0 : i32, i32
  }
  func.func @transform_5(%arg0: i32, %arg1: i32) -> (i32, i32) {
    %c0_i32 = arith.constant 0 : i32
    %c0_i32_0 = arith.constant 0 : i32
    return %arg0, %c0_i32 : i32, i32
  }
}

</mosaic_0001>

<bundles_post_ra>
// kernel: tpu_custom_call.1
= control target key start
LH: loop header
LB: loop body
LE: loop exit
PB: predicated region body
PF: predicated region fallthrough
CT: control target
= control target key end

     0   :  { %10 = vsyncpa [#allocation4], 0  ;;  %s1025_s0 = inlined_call_operand.hbm [shape: bf16[48,128], index: 0, kind: input, shape index: {}]   ;;  %s1026_s1 = inlined_call_operand.hbm [shape: bf16[1,128,256], index: 1, kind: input, shape index: {}]   ;;  %s1027_s2 = inlined_call_operand.hbm [shape: bf16[256,128], index: 2, kind: input, shape index: {}]   ;;  %s1028_s3 = inlined_call_operand.hbm [shape: f32[8,256], index: 3, kind: input, shape index: {}]   ;;  %s1029_s4 = inlined_call_operand.vmem [shape: f32[1,128], index: 4, kind: input, shape index: {}]   ;;  %s1030_s5 = inlined_call_operand.hbm [shape: f32[48,128], index: 5, kind: output, shape index: {}]  }
   0x1   :  { %11 = vsyncpa [#allocation7], 0 }
   0x2   :  { %12 = vsyncpa [#allocation10], 0 }
   0x3   :  { %13 = vsyncpa [#allocation5], 0  ;;  %s896_s18 = smov [#allocation6]  }
   0x4   :  { %s31_s19 = sshll.u32 %s896_s18, 4  ;;  %s32_s19 = int_to_ptr.vmem [resolvable:$true] %s31_s19 }
   0x5   :  { %s796_s20 = scalar_lea.vmem %s32_s19, 2048  ;;  %p801_p1 = scmp.lt.s32.totalorder %s32_s19, %s32_s19 }
   0x6   :  { %p797_p0 = scmp.ne.s32.totalorder %s32_s19, %s796_s20  ;;  %p802_p2 = scmp.lt.s32.totalorder %s796_s20, %s796_s20 }
   0x8   :  { %p803_p3 = por %p802_p2, %p801_p1 }
   0xa   :  { %p804_p4 = pnand %p803_p3, %p797_p0 }
   0xc   :  { %807 = shalt.err (!%p804_p4)
}
   0xd   :  { %s897_s21 = smov 128   ;;  %s898_s22 = smov 8  }
   0xe   :  { %37 = dma.hbm_to_vmem [thread:$0]  %s1026_s1, 2048, %s32_s19, [#allocation7], %s897_s21, %s897_s21, %s898_s22  }
   0xf   :  { %s899_s25 = smov [#allocation3]  }
  0x10   :  { %s19_s26 = sshll.u32 %s899_s25, 4  ;;  %s20_s26 = int_to_ptr.vmem [resolvable:$true] %s19_s26 }
  0x11   :  { %s816_s27 = scalar_lea.vmem %s20_s26, 384  ;;  %p821_p6 = scmp.lt.s32.totalorder %s20_s26, %s20_s26 }
  0x12   :  { %p817_p5 = scmp.ne.s32.totalorder %s20_s26, %s816_s27  ;;  %p822_p7 = scmp.lt.s32.totalorder %s816_s27, %s816_s27 }
  0x14   :  { %p823_p8 = por %p822_p7, %p821_p6 }
  0x16   :  { %p824_p9 = pnand %p823_p8, %p817_p5 }
  0x18   :  { %827 = shalt.err (!%p824_p9)
}
  0x19   :  { %s900_s28 = smov 64   ;;  %s901_s29 = smov 4  }
  0x1a   :  { %25 = dma.hbm_to_vmem [thread:$0]  %s1025_s0, 384, %s20_s26, [#allocation4], %s900_s28, %s900_s28, %s901_s29  }
  0x1b   :  { %s902_s7 = smov [#allocation8]   ;;  %s903_s9 = smov [#allocation9]  }
  0x1c   :  { %s43_s8 = sshll.u32 %s902_s7, 4  ;;  %s56_s1 = sshll.u32 %s903_s9, 4  ;;  %s44_s8 = int_to_ptr.vmem [resolvable:$true] %s43_s8  ;;  %s57_s1 = int_to_ptr.vmem [resolvable:$true] %s56_s1 }
  0x1d   :  { %s836_s10 = scalar_lea.vmem %s44_s8, 2048  ;;  %p841_p11 = scmp.lt.s32.totalorder %s44_s8, %s44_s8 }
  0x1e   :  { %p837_p10 = scmp.ne.s32.totalorder %s44_s8, %s836_s10  ;;  %p842_p12 = scmp.lt.s32.totalorder %s836_s10, %s836_s10 }
  0x20   :  { %p843_p13 = por %p842_p12, %p841_p11 }
  0x22   :  { %p844_p0 = pnand %p843_p13, %p837_p10 }
  0x24   :  { %847 = shalt.err (!%p844_p0)
}
  0x25   :  { %49 = dma.hbm_to_vmem [thread:$0]  %s1027_s2, 2048, %s44_s8, [#allocation7], %s900_s28, %s900_s28, %s901_s29  }
  0x26   :  { %s856_s13 = scalar_lea.vmem %s57_s1, 256  ;;  %p861_p2 = scmp.lt.s32.totalorder %s57_s1, %s57_s1 }
  0x27   :  { %p857_p1 = scmp.ne.s32.totalorder %s57_s1, %s856_s13  ;;  %p862_p3 = scmp.lt.s32.totalorder %s856_s13, %s856_s13 }
  0x29   :  { %p863_p4 = por %p862_p3, %p861_p2 }
  0x2b   :  { %p864_p5 = pnand %p863_p4, %p857_p1 }
  0x2d   :  { %867 = shalt.err (!%p864_p5)
}
  0x2e   :  { %59 = dma.hbm_to_vmem [thread:$0]  %s1028_s3, 256, %s57_s1, [#allocation10]  }
  0x2f   :  { %888 = dma.done.wait [#allocation4], 384  }
  0x30   :  { %889 = vsyncadd [#allocation4], 4294966912 }
  0x31   :  { %890 = dma.done.wait [#allocation7], 4096  }
  0x32   :  { %891 = vsyncadd [#allocation7], 4294963200 }
  0x33   :  { %892 = dma.done.wait [#allocation10], 256  }
  0x34   :  { %893 = vsyncadd [#allocation10], 4294967040  ;;  %v904_v0 = vmov 0   ;;  %v745_v1 = vld [vmem:[#allocation6 + $0x74] ss:$8 sps:$4 sm:$0xff]   ;;  %v776_v16 = vld [vmem:[#allocation8 + $0x68] sm:$0xff]   ;;  %v109_v36 = vlaneseq }
  0x35   :  { %249 = vmatprep.mubr.bf16.mxu0 %v904_v0  ;;  %v747_v2 = vld [vmem:[#allocation6 + $0x70] ss:$8 sps:$4 sm:$0xff]   ;;  %217 = vmatprep.subr.bf16.mxu0 %v745_v1  ;;  %v748_v3 = vld [vmem:[#allocation6 + $0x64] ss:$8 sps:$4 sm:$0xff]   ;;  %v750_v4 = vld [vmem:[#allocation6 + $0x60] ss:$8 sps:$4 sm:$0xff]  }
  0x36   :  { %218 = vmatpush1.bf16.msra.mxu0 %v747_v2  ;;  %v751_v5 = vld [vmem:[#allocation6 + $0x54] ss:$8 sps:$4 sm:$0xff]   ;;  %v753_v6 = vld [vmem:[#allocation6 + $0x50] ss:$8 sps:$4 sm:$0xff]   ;;  %v754_v7 = vld [vmem:[#allocation6 + $0x44] ss:$8 sps:$4 sm:$0xff]  }
  0x37   :  { %219 = vmatprep.subr.bf16.mxu0 %v748_v3  ;;  %v756_v8 = vld [vmem:[#allocation6 + $0x40] ss:$8 sps:$4 sm:$0xff]   ;;  %v757_v9 = vld [vmem:[#allocation6 + $0x34] ss:$8 sps:$4 sm:$0xff]   ;;  %v759_v10 = vld [vmem:[#allocation6 + $0x30] ss:$8 sps:$4 sm:$0xff]  }
  0x38   :  { %v760_v11 = vld [vmem:[#allocation6 + $0x24] ss:$8 sps:$4 sm:$0xff]   ;;  %v772_v12 = vld [vmem:[#allocation8 + $0x78] sm:$0xff]   ;;  %v774_v14 = vld [vmem:[#allocation8 + $0x70] sm:$0xff]   ;;  %v110_v37 = vshrl.u32 %v109_v36, 7 }
  0x39   :  { %v773_v13 = vld [vmem:[#allocation8 + $0x38] sm:$0xff]   ;;  %701 = vmatprep.subr.bf16.mxu1 %v772_v12  ;;  %v775_v15 = vld [vmem:[#allocation8 + $0x30] sm:$0xff]   ;;  %v762_v17 = vld [vmem:[#allocation6 + $0x20] ss:$8 sps:$4 sm:$0xff]  }
  0x3a   :  { %220 = vmatpush1.bf16.msra.mxu0 %v750_v4  ;;  %702 = vmatpush3.bf16.msra.mxu1 %v773_v13  ;;  %v763_v18 = vld [vmem:[#allocation6 + $0x14] ss:$8 sps:$4 sm:$0xff]   ;;  %v765_v19 = vld [vmem:[#allocation6 + $0x10] ss:$8 sps:$4 sm:$0xff]   ;;  %v777_v20 = vld [vmem:[#allocation8 + $0x28] sm:$0xff]   ;;  %v111_v38 = vsub.s32 0, %v110_v37 }
  0x3b   :  { %221 = vmatprep.subr.bf16.mxu0 %v751_v5  ;;  %703 = vmatprep.subr.bf16.mxu1 %v774_v14  ;;  %v778_v21 = vld [vmem:[#allocation8 + $0x60] sm:$0xff]   ;;  %v769_v25 = vld [vmem:[#allocation3] sm:$0xff]   ;;  %v770_v26 = vld [vmem:[#allocation3 + $0x8] sm:$0xff]   ;;  %v115_v39 = vsub.s32 1, %v110_v37 }
  0x3c   :  { %v766_v22 = vld [vmem:[#allocation6 + $0x4] ss:$8 sps:$4 sm:$0xff]   ;;  %v768_v24 = vld [vmem:[#allocation6] ss:$8 sps:$4 sm:$0xff]   ;;  %v771_v27 = vld [vmem:[#allocation3 + $0x10] sm:$0xff]  }
  0x3d   :  { %v779_v23 = vld [vmem:[#allocation8 + $0x20] sm:$0xff]   ;;  %v780_v28 = vld [vmem:[#allocation8 + $0x58] sm:$0xff]   ;;  %v782_v30 = vld [vmem:[#allocation8 + $0x50] sm:$0xff]  }
  0x3e   :  { %222 = vmatpush1.bf16.msra.mxu0 %v753_v6  ;;  %704 = vmatpush3.bf16.msra.mxu1 %v775_v15  ;;  %v781_v29 = vld [vmem:[#allocation8 + $0x18] sm:$0xff]   ;;  %v783_v31 = vld [vmem:[#allocation8 + $0x10] sm:$0xff]   ;;  %v784_v32 = vld [vmem:[#allocation8 + $0x48] sm:$0xff]  }
  0x3f   :  { %223 = vmatprep.subr.bf16.mxu0 %v754_v7  ;;  %705 = vmatprep.subr.bf16.mxu1 %v776_v16  ;;  %v785_v33 = vld [vmem:[#allocation8 + $0x8] sm:$0xff]   ;;  %v786_v34 = vld [vmem:[#allocation8 + $0x40] sm:$0xff]  }
  0x40   :  { %v787_v35 = vld [vmem:[#allocation8] sm:$0xff]  }
  0x41   :  { %v107_v40 = vld [vmem:[#allocation9] ss:$8 sm:$0x3]  ;;  %v306_v44 = vld [vmem:[#allocation9 + $0x1] ss:$8 sm:$0x3] }
  0x42   :  { %224 = vmatpush1.bf16.msra.mxu0 %v756_v8  ;;  %706 = vmatpush3.bf16.msra.mxu1 %v777_v20  ;;  %v951_v41 = vrot.slane %v107_v40, %v111_v38  ;;  %v953_v42 = vrot.slane %v107_v40, %v115_v39  ;;  %v955_v45 = vrot.slane %v306_v44, %v115_v39  ;;  %v331_v50 = vld [vmem:[#allocation9 + $0x3] ss:$8 sm:$0x3]  ;;  %v281_v52 = vld [vmem:[#allocation9 + $0x2] ss:$8 sm:$0x3] }
  0x43   :  { %225 = vmatprep.subr.bf16.mxu0 %v757_v9  ;;  %707 = vmatprep.subr.bf16.mxu1 %v778_v21  ;;  %v958_v48 = vrot.slane %v306_v44, %v111_v38  ;;  %v963_v55 = vrot.slane %v331_v50, %v115_v39  ;;  %v966_v58 = vrot.slane %v331_v50, %v111_v38 }
  0x44   :  { %v970_v61 = vrot.slane %v281_v52, %v111_v38  ;;  %v972_v63 = vrot.slane %v281_v52, %v115_v39 }
  0x46   :  { %226 = vmatpush1.bf16.msra.mxu0 %v759_v10  ;;  %708 = vmatpush3.bf16.msra.mxu1 %v779_v23 }
  0x47   :  { %227 = vmatprep.subr.bf16.mxu0 %v760_v11  ;;  %709 = vmatprep.subr.bf16.mxu1 %v780_v28 }
  0x4a   :  { %228 = vmatpush1.bf16.msra.mxu0 %v762_v17  ;;  %710 = vmatpush3.bf16.msra.mxu1 %v781_v29 }
  0x4b   :  { %229 = vmatprep.subr.bf16.mxu0 %v763_v18  ;;  %711 = vmatprep.subr.bf16.mxu1 %v782_v30 }
  0x4e   :  { %230 = vmatpush1.bf16.msra.mxu0 %v765_v19  ;;  %712 = vmatpush3.bf16.msra.mxu1 %v783_v31 }
  0x4f   :  { %231 = vmatprep.subr.bf16.mxu0 %v766_v22  ;;  %713 = vmatprep.subr.bf16.mxu1 %v784_v32 }
  0x52   :  { %232 = vmatpush1.bf16.msra.mxu0 %v768_v24  ;;  %714 = vmatpush3.bf16.msra.mxu1 %v785_v33 }
  0x53   :  { %715 = vmatprep.subr.bf16.mxu1 %v786_v34 }
  0x55   :  { %250 = vmatmul.mubr.bf16.vlgmr.msra.gmra.mxu0 %v769_v25 }
  0x56   :  { %259 = vmatprep.mubr.bf16.mxu0 %v904_v0  ;;  %716 = vmatpush3.bf16.msra.mxu1 %v787_v35 }
  0x5d   :  { %260 = vmatmul.mubr.bf16.gmra.mxu0 %v770_v26 }
  0x5e   :  { %269 = vmatprep.mubr.bf16.mxu0 %v904_v0 }
  0x65   :  { %270 = vmatmul.mubr.bf16.gmra.mxu0 %v771_v27 }
 0x115   :  { %v251_v43 = vpop.f32.mrf.mxu0 }
 0x116   :  { %v252_v47 = vadd.f32 %v251_v43, %v951_v41 }
 0x117   :  { %v253_v46 = vpop.f32.mrf.mxu0 }
 0x118   :  { %v254_v49 = vadd.f32 %v253_v46, %v953_v42  ;;  %v318_v57 = vmul.f32 %v958_v48, %v252_v47  ;;  %v293_v12 = vadd.f32 %v970_v61, %v252_v47 }
 0x119   :  { %v255_v51 = vpop.f32.mrf.mxu0 }
 0x11a   :  { %v319_v53 = vmul.f32 %v955_v45, %v254_v49  ;;  %v256_v54 = vadd.f32 %v255_v51, %v951_v41  ;;  %v343_v6 = vadd.f32 %v966_v58, %v318_v57  ;;  %v294_v10 = vadd.f32 %v972_v63, %v254_v49 }
 0x11b   :  { %v257_v56 = vpop.f32.mrf.mxu0  ;;  %vm355_vm3 = vcmp.gt.f32.partialorder %v293_v12, 0.0 }
 0x11c   :  { %v320_v59 = vmul.f32 %v958_v48, %v256_v54  ;;  %v258_v60 = vadd.f32 %v257_v56, %v953_v42  ;;  %v344_v3 = vadd.f32 %v963_v55, %v319_v53  ;;  %v295_v7 = vadd.f32 %v970_v61, %v256_v54 }
 0x11d   :  { %v261_v62 = vpop.f32.mrf.mxu0  ;;  %v367_v20 = vmax.f32 %v343_v6, 0.0  ;;  %vm356_vm2 = vcmp.gt.f32.partialorder %v294_v10, 0.0 }
 0x11e   :  { %v345_v0 = vadd.f32 %v966_v58, %v320_v59  ;;  %v321_v1 = vmul.f32 %v955_v45, %v258_v60  ;;  %v262_v2 = vadd.f32 %v261_v62, %v951_v41  ;;  %v296_v5 = vadd.f32 %v972_v63, %v258_v60 }
 0x11f   :  { %v263_v4 = vpop.f32.mrf.mxu0  ;;  %v368_v15 = vmax.f32 %v344_v3, 0.0  ;;  %vm357_vm1 = vcmp.gt.f32.partialorder %v295_v7, 0.0 }
 0x120   :  { %v264_v8 = vadd.f32 %v263_v4, %v953_v42  ;;  %v346_v11 = vadd.f32 %v963_v55, %v321_v1  ;;  %v369_v13 = vmax.f32 %v345_v0, 0.0  ;;  %v322_v14 = vmul.f32 %v958_v48, %v262_v2  ;;  %vm685_vm5 = vmpackc.low %vm357_vm1, %vm355_vm3 }
 0x121   :  { %v265_v9 = vpop.f32.mrf.mxu0  ;;  %vm358_vm0 = vcmp.gt.f32.partialorder %v296_v5, 0.0  ;;  %v297_v36 = vadd.f32 %v970_v61, %v262_v2 }
 0x122   :  { %v323_v16 = vmul.f32 %v955_v45, %v264_v8  ;;  %v266_v17 = vadd.f32 %v265_v9, %v951_v41  ;;  %v370_v19 = vmax.f32 %v346_v11, 0.0  ;;  %v686_v26 = vpack.c.bf16 %v369_v13, %v367_v20  ;;  %vm682_vm4 = vmpackc.low %vm358_vm0, %vm356_vm2 }
 0x123   :  { %v267_v18 = vpop.f32.mrf.mxu0  ;;  %v347_v29 = vadd.f32 %v966_v58, %v322_v14  ;;  %v298_v30 = vadd.f32 %v972_v63, %v264_v8  ;;  %vm359_vm10 = vcmp.gt.f32.partialorder %v297_v36, 0.0 }
 0x124   :  { %v268_v21 = vadd.f32 %v267_v18, %v953_v42  ;;  %v348_v22 = vadd.f32 %v963_v55, %v323_v16  ;;  %v324_v23 = vmul.f32 %v958_v48, %v266_v17  ;;  %v683_v25 = vpack.c.bf16 %v370_v19, %v368_v15 }
 0x125   :  { %v271_v24 = vpop.f32.mrf.mxu0  ;;  %v299_v33 = vadd.f32 %v970_v61, %v266_v17  ;;  %v371_v46 = vmax.f32 %v347_v29, 0.0  ;;  %vm360_vm7 = vcmp.gt.f32.partialorder %v298_v30, 0.0 }
 0x126   :  { %v300_v27 = vadd.f32 %v972_v63, %v268_v21  ;;  %v325_v28 = vmul.f32 %v955_v45, %v268_v21  ;;  %v349_v31 = vadd.f32 %v966_v58, %v324_v23  ;;  %684 = vmatprep.mubr.msk.bf16.mxu1 %vm682_vm4, %v683_v25  ;;  %v272_v35 = vadd.f32 %v271_v24, %v951_v41 }
 0x127   :  { %v273_v32 = vpop.f32.mrf.mxu0  ;;  %687 = vmatmul.mubr.msk.bf16.vlgmr.msra.gmra.mxu1 %vm685_vm5, %v686_v26  ;;  %v372_v37 = vmax.f32 %v348_v22, 0.0  ;;  %vm361_vm8 = vcmp.gt.f32.partialorder %v299_v33, 0.0 }
 0x128   :  { %v350_v34 = vadd.f32 %v963_v55, %v325_v28  ;;  %v274_v38 = vadd.f32 %v273_v32, %v953_v42  ;;  %v373_v40 = vmax.f32 %v349_v31, 0.0  ;;  %vm362_vm6 = vcmp.gt.f32.partialorder %v300_v27, 0.0  ;;  %vm691_vm11 = vmpackc.low %vm361_vm8, %vm359_vm10 }
 0x129   :  { %v275_v39 = vpop.f32.mrf.mxu0  ;;  %v326_v51 = vmul.f32 %v958_v48, %v272_v35  ;;  %vm688_vm9 = vmpackc.low %vm362_vm6, %vm360_vm7  ;;  %v301_v0 = vadd.f32 %v970_v61, %v272_v35 }
 0x12a   :  { %v374_v43 = vmax.f32 %v350_v34, 0.0  ;;  %v276_v44 = vadd.f32 %v275_v39, %v951_v41  ;;  %v327_v47 = vmul.f32 %v955_v45, %v274_v38  ;;  %v692_v54 = vpack.c.bf16 %v373_v40, %v371_v46 }
 0x12b   :  { %v277_v49 = vpop.f32.mrf.mxu0  ;;  %v351_v60 = vadd.f32 %v966_v58, %v326_v51  ;;  %vm363_vm15 = vcmp.gt.f32.partialorder %v301_v0, 0.0 }
 0x12c   :  { %v689_v50 = vpack.c.bf16 %v374_v43, %v372_v37  ;;  %v328_v52 = vmul.f32 %v958_v48, %v276_v44  ;;  %v278_v53 = vadd.f32 %v277_v49, %v953_v42  ;;  %v352_v41 = vadd.f32 %v963_v55, %v327_v47 }
 0x12d   :  { %v303_v62 = vadd.f32 %v970_v61, %v276_v44  ;;  %v302_v42 = vadd.f32 %v972_v63, %v274_v38  ;;  %v375_v4 = vmax.f32 %v351_v60, 0.0 }
 0x12e   :  { %v353_v56 = vadd.f32 %v966_v58, %v328_v52  ;;  %690 = vmatprep.mubr.msk.bf16.mxu1 %vm688_vm9, %v689_v50  ;;  %v304_v57 = vadd.f32 %v972_v63, %v278_v53  ;;  %v329_v59 = vmul.f32 %v955_v45, %v278_v53  ;;  %v376_v2 = vmax.f32 %v352_v41, 0.0 }
 0x12f   :  { %693 = vmatmul.mubr.msk.bf16.gmra.mxu1 %vm691_vm11, %v692_v54  ;;  %vm365_vm13 = vcmp.gt.f32.partialorder %v303_v62, 0.0  ;;  %vm364_vm14 = vcmp.gt.f32.partialorder %v302_v42, 0.0 }
 0x130   :  { %v354_v48 = vadd.f32 %v963_v55, %v329_v59  ;;  %v377_v1 = vmax.f32 %v353_v56, 0.0  ;;  %vm366_vm12 = vcmp.gt.f32.partialorder %v304_v57, 0.0  ;;  %vm697_vm1 = vmpackc.low %vm365_vm13, %vm363_vm15  ;;  %v700_v55 = vld [vmem:[%s1029_s4] ss:$0 sm:$0xff]  ;;  %s905_s4 = smov [#allocation11]  }
 0x131   :  { %vm694_vm0 = vmpackc.low %vm366_vm12, %vm364_vm14  ;;  %s633_s15 = sshll.u32 %s905_s4, 4  ;;  %s634_s15 = int_to_ptr.vmem [resolvable:$true] %s633_s15 }
 0x132   :  { %v378_v3 = vmax.f32 %v354_v48, 0.0  ;;  %v698_v5 = vpack.c.bf16 %v377_v1, %v375_v4  ;;  %s868_s16 = scalar_lea.vmem %s634_s15, 768  ;;  %p873_p7 = scmp.lt.s32.totalorder %s634_s15, %s634_s15 }
 0x133   :  { %p869_p6 = scmp.ne.s32.totalorder %s634_s15, %s868_s16  ;;  %p874_p8 = scmp.lt.s32.totalorder %s868_s16, %s868_s16 }
 0x134   :  { %v695_v45 = vpack.c.bf16 %v378_v3, %v376_v2 }
 0x135   :  { %p875_p9 = por %p874_p8, %p873_p7 }
 0x136   :  { %696 = vmatprep.mubr.msk.bf16.mxu1 %vm694_vm0, %v695_v45 }
 0x137   :  { %699 = vmatmul.mubr.msk.bf16.gmra.mxu1 %vm697_vm1, %v698_v5  ;;  %p876_p10 = pnand %p875_p9, %p869_p6 }
 0x1e7   :  { %v717_v58 = vpop.f32.mrf.mxu1 }
 0x1e9   :  { %v718_v63 = vpop.f32.mrf.mxu1 }
 0x1ea   :  { %v719_v61 = vadd.f32 %v718_v63, %v717_v58 }
 0x1eb   :  { %v720_v6 = vpop.f32.mrf.mxu1 }
 0x1ec   :  { %v616_v7 = vadd.f32 %v719_v61, %v700_v55 }
 0x1ed   :  { %v721_v8 = vpop.f32.mrf.mxu1 }
 0x1ee   :  { %622 = vst [vmem:[#allocation11] sm:$0xff] %v616_v7  ;;  %v722_v9 = vadd.f32 %v721_v8, %v720_v6 }
 0x1ef   :  { %v723_v10 = vpop.f32.mrf.mxu1 }
 0x1f0   :  { %v617_v11 = vadd.f32 %v722_v9, %v700_v55 }
 0x1f1   :  { %v724_v12 = vpop.f32.mrf.mxu1 }
 0x1f2   :  { %623 = vst [vmem:[#allocation11 + $0x8] sm:$0xff] %v617_v11  ;;  %v725_v13 = vadd.f32 %v724_v12, %v723_v10 }
 0x1f3   :  { %v726_v14 = vpop.f32.mrf.mxu1 }
 0x1f4   :  { %v618_v15 = vadd.f32 %v725_v13, %v700_v55 }
 0x1f5   :  { %v727_v16 = vpop.f32.mrf.mxu1 }
 0x1f6   :  { %624 = vst [vmem:[#allocation11 + $0x10] sm:$0xff] %v618_v15  ;;  %v728_v17 = vadd.f32 %v727_v16, %v726_v14 }
 0x1f7   :  { %v729_v18 = vpop.f32.mrf.mxu1 }
 0x1f8   :  { %v619_v19 = vadd.f32 %v728_v17, %v700_v55 }
 0x1f9   :  { %v730_v20 = vpop.f32.mrf.mxu1 }
 0x1fa   :  { %625 = vst [vmem:[#allocation11 + $0x18] sm:$0xff] %v619_v19  ;;  %v731_v21 = vadd.f32 %v730_v20, %v729_v18 }
 0x1fb   :  { %v732_v22 = vpop.f32.mrf.mxu1 }
 0x1fc   :  { %v620_v23 = vadd.f32 %v731_v21, %v700_v55 }
 0x1fd   :  { %v733_v24 = vpop.f32.mrf.mxu1 }
 0x1fe   :  { %626 = vst [vmem:[#allocation11 + $0x20] sm:$0xff] %v620_v23  ;;  %v734_v25 = vadd.f32 %v733_v24, %v732_v22 }
 0x200   :  { %v621_v26 = vadd.f32 %v734_v25, %v700_v55 }
 0x202   :  { %627 = vst [vmem:[#allocation11 + $0x28] sm:$0xff] %v621_v26 }
 0x203   :  { %879 = shalt.err (!%p876_p10)
}
 0x204   :  { %639 = dma.vmem_to_hbm [thread:$0]  %s634_s15, 768, %s1030_s5, [#allocation5], %s897_s21, %s897_s21, %s898_s22  }
 0x205   :  { %894 = dma.done.wait [#allocation5], 768  }
 0x206   :  { %895 = vsyncadd [#allocation5], 4294966528 }
 0x207   :  { %643 = vsyncpa [#allocation4], 1 }
 0x208   :  { %644 = vsyncpa [#allocation7], 1 }
 0x209   :  { %645 = vsyncpa [#allocation10], 1 }
 0x20a   :  { %646 = vsyncpa [#allocation5], 1 }

</bundles_post_ra>
